<compile_context>
chip_gen: v7x
topology: tpu7x:2x2x1
jax: 0.10.0
libtpu: 0.0.40
codegen_flags: <defaults>
</compile_context>

<pallas_src>
import jax
import jax.numpy as jnp
from jax.experimental import pallas as pl
from jax.experimental.pallas import tpu as pltpu


def _rup(v, m):
    return ((v + m - 1) // m) * m


def _largest_divisor_leq(n, cap):
    cap = max(1, min(n, cap))
    for d in range(cap, 0, -1):
        if n % d == 0:
            return d
    return 1


def _make_pool_mm_kernel(tb, c, tk, nk, rem, inv_hw):
    n_chunks = tk // 128

    def _fold(x_ref, valid):
        # Fold the tk lanes of the current tile into 128 lanes with
        # elementwise (VPU) adds.  `valid` is a *static* count of valid lanes
        # in this tile; lanes >= valid (ragged tail garbage) are masked out.
        total = None
        for j in range(n_chunks):
            lo = j * 128
            if lo >= valid:
                break
            chunk = x_ref[:, :, lo:lo + 128].astype(jnp.float32)
            if valid < lo + 128:
                lane = jax.lax.broadcasted_iota(jnp.int32, chunk.shape, 2)
                chunk = jnp.where(lane < (valid - lo), chunk, 0.0)
            total = chunk if total is None else total + chunk
        return total

    def kernel(x_ref, w_ref, o_ref, acc_ref):
        # x_ref:   (tb, c, tk)        current spatial tile (auto-pipelined)
        # w_ref:   (c, c)             fused (conv2 @ conv1)^T, VMEM-resident
        # o_ref:   (1, tb, c)         output block for this batch block
        # acc_ref: (tb, c, 128) f32   persistent partial-sum accumulator
        k = pl.program_id(1)

        @pl.when(k == 0)
        def _init():
            acc_ref[...] = jnp.zeros_like(acc_ref)

        if rem == tk:
            # Spatial extent divides tk: no masking anywhere.
            acc_ref[...] += _fold(x_ref, tk)
        elif nk == 1:
            # Single (ragged) tile: always masked.
            acc_ref[...] += _fold(x_ref, rem)
        else:
            @pl.when(k < nk - 1)
            def _body():
                acc_ref[...] += _fold(x_ref, tk)

            @pl.when(k == nk - 1)
            def _tail():
                acc_ref[...] += _fold(x_ref, rem)

        @pl.when(k == nk - 1)
        def _finalize():
            # Single final 128-lane reduce + mean scale -> (tb, c)
            pooled = jnp.sum(acc_ref[...], axis=-1) * inv_hw
            w = w_ref[...]
            # Feed the MXU in the weight's native dtype (no f32 upcast of the
            # weights); cast the tiny pooled activation instead if needed.
            lhs = pooled if w.dtype == jnp.float32 else pooled.astype(w.dtype)
            out = jnp.dot(lhs, w, preferred_element_type=jnp.float32)   # (tb, c)
            o_ref[...] = out[None].astype(o_ref.dtype)

    return kernel


def attention_to_1x1(x, w1, w2, *, tk=None,
                     x_block_budget_bytes=8 * 1024 * 1024):
    """Pallas TPU version of attention_to_1x1.forward.

    x:  (B, C, H, W) NCHW activation
    w1: (2C, C)  conv1 weight (kernel_size=1, bias=False), squeezed
    w2: (C, 2C)  conv2 weight (kernel_size=1, bias=False), squeezed
    Returns xx: (B, C, 1, 1), matching the PyTorch module.
    """
    B, C, H, W = x.shape
    hw = H * W
    itemsize = jnp.dtype(x.dtype).itemsize

    # Fuse the two bias-free 1x1 convs (no nonlinearity between them in the
    # module): xx = pooled @ (W2 @ W1)^T.  Quarters resident weight VMEM and
    # halves the per-batch-block epilogue matmul work.
    w_fused = (w2 @ w1).T                                     # (C, C)
    w_itemsize = jnp.dtype(w_fused.dtype).itemsize

    # ---- VMEM budgeting ------------------------------------------------------
    VMEM_CAP = 48 * 1024 * 1024          # safe on v7x (64 MiB/TC) and v5e/v6e
    w_buf = _rup(C, 8) * _rup(C, 128) * w_itemsize            # one weight buffer
    x_budget = min(x_block_budget_bytes,
                   max(1 << 20, (VMEM_CAP - 2 * w_buf - (4 << 20)) // 3))

    # ---- tile-size selection -------------------------------------------------
    hw128 = _rup(hw, 128)
    if tk is None:
        tk = min(hw128, 2048)
        # Keep per-step bytes large: shrink tk only if a single batch row at
        # this tk blows the x budget; floor at 512, last resort 256.  Never 128.
        while tk > 512 and C * tk * itemsize > x_budget:
            tk -= 128
        while tk > 256 and C * tk * itemsize > 2 * x_budget:
            tk -= 128
    assert tk % 128 == 0, "tk must be a multiple of 128"
    nk = pl.cdiv(hw, tk)                       # no HBM pad: ragged tail masked
    rem = hw - (nk - 1) * tk                   # static valid-lane count, 1..tk

    row_bytes = C * tk * itemsize
    tb_cap = max(1, x_budget // row_bytes)
    tb = _largest_divisor_leq(B, tb_cap)       # tb divides B -> no batch pad
    # Megacore (v7x): prefer nb >= 2 when it keeps per-step blocks >= 1 MiB.
    if B >= 2 and tb == B:
        tb_half = _largest_divisor_leq(B, B // 2)
        if tb_half * row_bytes >= (1 << 20):
            tb = tb_half
    nb = B // tb

    # ---- explicit VMEM limit from the actual footprint ------------------------
    x_buf = tb * _rup(C, 8) * tk * itemsize
    acc_buf = tb * _rup(C, 8) * 128 * 4
    out_buf = _rup(tb, 8) * _rup(C, 128) * itemsize
    footprint = 2 * x_buf + 2 * w_buf + acc_buf + 2 * out_buf + (2 << 20)
    vmem_limit = int(max(32 << 20, footprint))

    x_flat = x.reshape(B, C, hw)               # free reshape, no HBM copy
    kernel = _make_pool_mm_kernel(tb, C, tk, nk, rem, 1.0 / float(hw))

    out = pl.pallas_call(
        kernel,
        out_shape=jax.ShapeDtypeStruct((nb, tb, C), x.dtype),
        grid_spec=pltpu.PrefetchScalarGridSpec(
            num_scalar_prefetch=0,
            grid=(nb, nk),
            in_specs=[
                pl.BlockSpec((tb, C, tk), lambda b, k: (b, 0, k)),
                pl.BlockSpec((C, C), lambda b, k: (0, 0)),   # VMEM-resident
            ],
            out_specs=pl.BlockSpec((1, tb, C), lambda b, k: (b, 0, 0)),
            scratch_shapes=[pltpu.VMEM((tb, C, 128), jnp.float32)],
        ),
        compiler_params=pltpu.CompilerParams(
            dimension_semantics=("parallel", "arbitrary"),
            vmem_limit_bytes=vmem_limit,
        ),
    )(x_flat, w_fused)

    return out.reshape(B, C).reshape(B, C, 1, 1)


def _reference(x, w1, w2):
    pooled = jnp.mean(x, axis=(2, 3))              # (B, C)
    xx = (pooled @ w1.T) @ w2.T                    # (B, C)
    return xx.reshape(x.shape[0], x.shape[1], 1, 1)


if __name__ == "__main__":
    key = jax.random.PRNGKey(0)
    kx, k1, k2, kx2, k3, k4, kx3 = jax.random.split(key, 7)

    # Config 1: B=2, C=4, 16x16 spatial.  tk=128 forces a 2-step reduction grid
    # so the init/accumulate/finalize path is exercised.
    B, C, H, W = 2, 4, 16, 16
    x = jax.random.normal(kx, (B, C, H, W), dtype=jnp.float32)
    # conv1.weight: (2C, C, 1, 1) -> (2C, C); conv2.weight: (C, 2C, 1, 1) -> (C, 2C)
    w1 = jax.random.normal(k1, (2 * C, C), dtype=jnp.float32) * 0.1
    w2 = jax.random.normal(k2, (C, 2 * C), dtype=jnp.float32) * 0.1

    xx = jax.block_until_ready(attention_to_1x1(x, w1, w2, tk=128))
    ref = _reference(x, w1, w2)
    assert xx.shape == (B, C, 1, 1), xx.shape
    assert jnp.allclose(xx, ref, atol=1e-5, rtol=1e-5)

    # Config 2: non-multiple-of-128 spatial (10x10) and B=3 exercise the
    # in-kernel ragged-tail masking and the divides-B batch tiling (no pads).
    B2, C2, H2, W2 = 3, 4, 10, 10
    x2 = jax.random.normal(kx2, (B2, C2, H2, W2), dtype=jnp.float32)
    xx2 = jax.block_until_ready(attention_to_1x1(x2, w1, w2))
    ref2 = _reference(x2, w1, w2)
    assert xx2.shape == (B2, C2, 1, 1), xx2.shape
    assert jnp.allclose(xx2, ref2, atol=1e-5, rtol=1e-5)

    # Config 3: C=8, 24x24 spatial with tk=256 -> multi-step reduction with a
    # multi-chunk fold and a masked ragged tail (576 = 2*256 + 64).
    B3, C3, H3, W3 = 2, 8, 24, 24
    x3 = jax.random.normal(kx3, (B3, C3, H3, W3), dtype=jnp.float32)
    w1b = jax.random.normal(k3, (2 * C3, C3), dtype=jnp.float32) * 0.1
    w2b = jax.random.normal(k4, (C3, 2 * C3), dtype=jnp.float32) * 0.1
    xx3 = jax.block_until_ready(attention_to_1x1(x3, w1b, w2b, tk=256))
    ref3 = _reference(x3, w1b, w2b)
    assert xx3.shape == (B3, C3, 1, 1), xx3.shape
    assert jnp.allclose(xx3, ref3, atol=1e-5, rtol=1e-5)

    print("KERNEL_OK")
</pallas_src>

<mosaic_0001>
module attributes {stable_mosaic.version = 11 : i64} {
  func.func @kernel(%arg0: i32, %arg1: i32, %arg2: memref<2x4x128xf32, #tpu.memory_space<vmem>>, %arg3: memref<4x4xf32, #tpu.memory_space<vmem>>, %arg4: memref<1x2x4xf32, #tpu.memory_space<vmem>>, %arg5: memref<2x4x128xf32, #tpu.memory_space<vmem>>) attributes {dimension_semantics = [#tpu.dimension_semantics<parallel>, #tpu.dimension_semantics<arbitrary>], iteration_bounds = array<i64: 1, 2>, scalar_prefetch = 0 : i64, scratch_operands = 1 : i64, tpu.core_type = #tpu.core_type<tc>, window_params = [{transform_indices = @transform_0, window_bounds = array<i64: 2, 4, 128>}, {pipeline_mode = #tpu.pipeline_mode<synchronous>, transform_indices = @transform_1, window_bounds = array<i64: 4, 4>}, {transform_indices = @transform_2, window_bounds = array<i64: 1, 2, 4>}]} {
    %c0_i32 = arith.constant 0 : i32
    %0 = arith.cmpi eq, %arg1, %c0_i32 : i32
    %1 = arith.extui %0 : i1 to i32
    %c0_i32_0 = arith.constant 0 : i32
    %2 = arith.cmpi ne, %1, %c0_i32_0 : i32
    scf.if %2 {
      %cst = arith.constant 0.000000e+00 : f32
      %10 = vector.broadcast %cst : f32 to vector<2x4x128xf32>
      %c0_10 = arith.constant 0 : index
      %c0_11 = arith.constant 0 : index
      %c0_12 = arith.constant 0 : index
      %11 = vector.load %arg5[%c0_10, %c0_11, %c0_12] : memref<2x4x128xf32, #tpu.memory_space<vmem>>, vector<2x4x128xf32>
      tpu.vector_store %arg5[%c0_10, %c0_11, %c0_12], %10 {strides = array<i32>} : memref<2x4x128xf32, #tpu.memory_space<vmem>>, vector<2x4x128xf32>,
    } else {
    }
    %c0 = arith.constant 0 : index
    %c0_1 = arith.constant 0 : index
    %c0_2 = arith.constant 0 : index
    %3 = vector.load %arg5[%c0, %c0_1, %c0_2] : memref<2x4x128xf32, #tpu.memory_space<vmem>>, vector<2x4x128xf32>
    %c0_3 = arith.constant 0 : index
    %c0_4 = arith.constant 0 : index
    %c0_5 = arith.constant 0 : index
    %4 = vector.load %arg2[%c0_3, %c0_4, %c0_5] : memref<2x4x128xf32, #tpu.memory_space<vmem>>, vector<2x4x128xf32>
    %5 = arith.addf %3, %4 : vector<2x4x128xf32>
    %c0_6 = arith.constant 0 : index
    %c0_7 = arith.constant 0 : index
    %c0_8 = arith.constant 0 : index
    %6 = vector.load %arg5[%c0_6, %c0_7, %c0_8] : memref<2x4x128xf32, #tpu.memory_space<vmem>>, vector<2x4x128xf32>
    tpu.vector_store %arg5[%c0_6, %c0_7, %c0_8], %5 {strides = array<i32>} : memref<2x4x128xf32, #tpu.memory_space<vmem>>, vector<2x4x128xf32>,
    %c1_i32 = arith.constant 1 : i32
    %7 = arith.cmpi eq, %arg1, %c1_i32 : i32
    %8 = arith.extui %7 : i1 to i32
    %c0_i32_9 = arith.constant 0 : i32
    %9 = arith.cmpi ne, %8, %c0_i32_9 : i32
    scf.if %9 {
      %c0_10 = arith.constant 0 : index
      %c0_11 = arith.constant 0 : index
      %c0_12 = arith.constant 0 : index
      %10 = vector.load %arg5[%c0_10, %c0_11, %c0_12] : memref<2x4x128xf32, #tpu.memory_space<vmem>>, vector<2x4x128xf32>
      %cst = arith.constant dense<0.000000e+00> : vector<2x4xf32>
      %11 = vector.multi_reduction <add>, %10, %cst [2] : vector<2x4x128xf32> to vector<2x4xf32>
      %cst_13 = arith.constant 3.906250e-03 : f32
      %12 = vector.broadcast %cst_13 : f32 to vector<2x4xf32>
      %13 = arith.mulf %11, %12 : vector<2x4xf32>
      %c0_14 = arith.constant 0 : index
      %c0_15 = arith.constant 0 : index
      %14 = vector.load %arg3[%c0_14, %c0_15] : memref<4x4xf32, #tpu.memory_space<vmem>>, vector<4x4xf32>
      %cst_16 = arith.constant dense<0.000000e+00> : vector<2x4xf32>
      %15 = tpu.matmul %13, %14, %cst_16 {dimension_numbers = #tpu.dot_dimension_numbers<[1], [0], [0], [1], [0, 0, 1, 1], [], []>} : vector<2x4xf32>, vector<4x4xf32>, vector<2x4xf32> -> vector<2x4xf32>
      %16 = vector.shape_cast %15 : vector<2x4xf32> to vector<1x2x4xf32>
      %c0_17 = arith.constant 0 : index
      %c0_18 = arith.constant 0 : index
      %c0_19 = arith.constant 0 : index
      %17 = vector.load %arg4[%c0_17, %c0_18, %c0_19] : memref<1x2x4xf32, #tpu.memory_space<vmem>>, vector<1x2x4xf32>
      tpu.vector_store %arg4[%c0_17, %c0_18, %c0_19], %16 {strides = array<i32>} : memref<1x2x4xf32, #tpu.memory_space<vmem>>, vector<1x2x4xf32>,
    } else {
    }
    return
  }
  func.func @transform_0(%arg0: i32, %arg1: i32) -> (i32, i32, i32) {
    %c0_i32 = arith.constant 0 : i32
    %c0_i32_0 = arith.constant 0 : i32
    return %arg0, %c0_i32, %arg1 : i32, i32, i32
  }
  func.func @transform_1(%arg0: i32, %arg1: i32) -> (i32, i32) {
    %c0_i32 = arith.constant 0 : i32
    %c0_i32_0 = arith.constant 0 : i32
    %c0_i32_1 = arith.constant 0 : i32
    return %c0_i32, %c0_i32_0 : i32, i32
  }
  func.func @transform_2(%arg0: i32, %arg1: i32) -> (i32, i32, i32) {
    %c0_i32 = arith.constant 0 : i32
    %c0_i32_0 = arith.constant 0 : i32
    %c0_i32_1 = arith.constant 0 : i32
    return %arg0, %c0_i32, %c0_i32_0 : i32, i32, i32
  }
}

</mosaic_0001>

<bundles_post_ra>
// kernel: tpu_custom_call.1
= control target key start
LH: loop header
LB: loop body
LE: loop exit
PB: predicated region body
PF: predicated region fallthrough
CT: control target
= control target key end

     0   :  { %7 = vsyncpa [#allocation4], 0  ;;  %s851_s0 = inlined_call_operand.hbm [shape: f32[2,4,256], index: 0, kind: input, shape index: {}]   ;;  %s852_s1 = inlined_call_operand.hbm [shape: f32[4,4], index: 1, kind: input, shape index: {}]   ;;  %s853_s2 = inlined_call_operand.hbm [shape: f32[1,2,4], index: 2, kind: output, shape index: {}]  }
   0x1   :  { %9 = vsyncpa [#allocation4 + $0x1], 0 }
   0x2   :  { %10 = vsyncpa [#allocation7], 0 }
   0x3   :  { %11 = vsyncpa [#allocation5], 0  ;;  %s660_s9 = smov 0   ;;  %s662_s10 = smov 0  }
   0x4   :  { %s664_s11 = smov 0   ;;  %s666_s12 = smov 0  }
   0x5   :  { %s668_s13 = smov 0   ;;  %s670_s14 = smov 0  }
   0x6 LB: > { %s389_s15 = sadd.s32 4294967295, %s634_s14   ;;  %s38_s16 = sadd.s32 1, %s622_s11  ;;  %s634_s14 = sphi %s670_s14, %s17_s14   ;;  %s630_s13 = sphi %s668_s13, %s873_s13   ;;  %s626_s12 = sphi %s666_s12, %s872_s12   ;;  %s622_s11 = sphi %s664_s11, %s871_s11   ;;  %s618_s10 = sphi %s662_s10, %s870_s10   ;;  %s614_s9 = sphi %s660_s9, %s869_s9  }
   0x7   : > { %p45_p0 = scmp.ne.s32.totalorder %s622_s11, %s618_s10  ;;  %p46_p1 = scmp.eq.s32.totalorder %s634_s14, 0 }
   0x8   : > { %p51_p2 = scmp.ne.s32.totalorder %s618_s10, %s614_s9  ;;  %p696_p3 = scmp.eq.s32.totalorder %s389_s15, 0 }
   0x9   : > { %p47_p4 = por %p46_p1, %p45_p0  ;;  %p390_p5 = scmp.ge.s32.totalorder %s634_s14, 1 }
   0xa   : > { %s859_s17 = scalar_select %p696_p3, 1, 0 }
   0xb   : > { %p703_p6 = por %p696_p3, %p51_p2  ;;  %p109_p7 = scmp.lt.s32.totalorder %s634_s14, 3 }
   0xc   : > { %s636_s20 = smov [#allocation6]   ;;  %p432_p10 = scmp.lt.s32.totalorder %s634_s14, 2 }
   0xd   : > { %s860_s18 = scalar_select %p703_p6, 1, 0 }
   0xe   : > { %p708_p8 = pnand %p390_p5, %p109_p7  ;;  %s122_s21 = sshll.u32 %s636_s20, 4  ;;  %s123_s21 = int_to_ptr.vmem [resolvable:$true] %s122_s21 }
   0xf   : > { %s133_s22 = sand.u32 1, %s622_s11   ;;  %p722_p12 = pnand %p432_p10, %p47_p4 }
  0x10   : > { %s861_s19 = scalar_select %p708_p8, 1, 0 }
  0x11   : > { %p423_p9 = pneg %p708_p8  ;;  %s492_s27 = scalar_lea.hbm %s852_s1, 64 }
  0x12   : > { %s863_s24 = scalar_select %p722_p12, 1, 0 }
  0x13   : > { %p718_p11 = pnand %p423_p9, %p696_p3  ;;  %p493_p13 = scmp.ne.s32.totalorder %s852_s1, %s492_s27 }
  0x14   : > { %p499_p5 = scmp.lt.u32.totalorder %s492_s27, %s852_s1 }
  0x15   : > { %p494_p0 = pneg %p718_p11 }
  0x17   : > { %p495_p1 = pnand %p494_p0, %p493_p13 }
  0x19   : > { %p496_p2 = pneg %p495_p1 }
  0x1b   : > { %p501_p4 = pnand %p499_p5, %p496_p2 }
  0x1d   : > { %504 = shalt.err (!%p501_p4)
}
  0x1e   : > { %s505_s4 = scalar_lea.vmem %s123_s21, 64  ;;  %p513_p3 = scmp.lt.s32.totalorder %s123_s21, %s123_s21 }
  0x1f   : > { %p506_p7 = scmp.ne.s32.totalorder %s123_s21, %s505_s4  ;;  %p514_p6 = scmp.lt.s32.totalorder %s505_s4, %s505_s4 }
  0x21   : > { %p508_p9 = pnand %p506_p7, %p494_p0  ;;  %p515_p8 = por %p514_p6, %p513_p3 }
  0x23   : > { %p509_p10 = pneg %p508_p9 }
  0x25   : > { %p516_p12 = pnand %p515_p8, %p509_p10 }
  0x27   : > { %519 = shalt.err (!%p516_p12)
}
  0x28   : > { %426 = dma.hbm_to_vmem [thread:$0]  (!%p718_p11), %s852_s1, 64, %s123_s21, [#allocation7]  }
  0x29   : > { %s26_s7 = sadd.s32 1, %s630_s13  ;;  %s393_s8 = sshll.u32 %s133_s22, 3 }
  0x2a   : > { %p27_p3 = scmp.ge.s32.totalorder %s26_s7, 2  ;;  %s394_s9 = sshll.u32 %s630_s13, 6 }
  0x2b   : > { %s137_s20 = scalar_lea.vmem [#allocation3], %s393_s8  ;;  %s751_s27 = scalar_lea.hbm %s851_s0, %s394_s9 }
  0x2c   : > { %s146_s23 = sshll.u32 %s137_s20, 4  ;;  %s875_s7 = smov (%p27_p3, %s26_s7), 0  ;;  %s753_s23 = int_to_ptr.vmem [resolvable:$true] %s146_s23 }
  0x2d   : > { %s34_s21 = ssub.s32 %s630_s13, %s875_s7  ;;  %s764_s29 = scalar_lea.sflag [#allocation4], %s133_s22 }
  0x2e   : > { %p36_p6 = scmp.eq.s32.totalorder %s34_s21, 0  ;;  %s520_s30 = scalar_lea.hbm %s751_s27, 128 }
  0x2f   : > { %p521_p8 = scmp.ne.s32.totalorder %s751_s27, %s520_s30  ;;  %p864_p11 = scmp.ne.s32.totalorder %s863_s24, 0 }
  0x30   : > { %s760_s28 = scalar_select %p36_p6, %s622_s11, %s38_s16  }
  0x31   : > { %p522_p12 = pneg %p864_p11  ;;  %s525_s5 = scalar_lea.hbm %s851_s0, 256 }
  0x32   : > { %p526_p1 = scmp.lt.u32.totalorder %s751_s27, %s851_s0  ;;  %p527_p2 = scmp.lt.u32.totalorder %s525_s5, %s520_s30 }
  0x33   : > { %p523_p13 = pnand %p522_p12, %p521_p8  ;;  %p529_p4 = scmp.lt.u32.totalorder %s520_s30, %s751_s27 }
  0x34   : > { %p528_p5 = por %p527_p2, %p526_p1 }
  0x35   : > { %p524_p0 = pneg %p523_p13 }
  0x36   : > { %p530_p7 = por %p529_p4, %p528_p5 }
  0x38   : > { %p531_p9 = pnand %p530_p7, %p524_p0 }
  0x3a   : > { %534 = shalt.err (!%p531_p9)
}
  0x3b   : > { %s535_s16 = scalar_lea.vmem %s753_s23, 128  ;;  %s637_s22 = smov [#allocation3]  }
  0x3c   : > { %p536_p10 = scmp.ne.s32.totalorder %s753_s23, %s535_s16  ;;  %s540_s9 = sshll.u32 %s637_s22, 4  ;;  %s541_s9 = int_to_ptr.vmem [resolvable:$false] %s540_s9 }
  0x3d   : > { %s542_s20 = scalar_lea.vmem %s541_s9, 256  ;;  %p543_p8 = scmp.lt.s32.totalorder %s753_s23, %s541_s9 }
  0x3e   : > { %p538_p3 = pnand %p536_p10, %p522_p12  ;;  %p544_p13 = scmp.lt.s32.totalorder %s542_s20, %s535_s16 }
  0x40   : > { %p539_p6 = pneg %p538_p3  ;;  %p545_p1 = por %p544_p13, %p543_p8 }
  0x42   : > { %p546_p2 = pnand %p545_p1, %p539_p6 }
  0x44   : > { %549 = shalt.err (!%p546_p2)
}
  0x45   : > { %s638_s25 = smov 128   ;;  %s639_s26 = smov 64  }
  0x46   : > { %s640_s21 = smov 4   ;;  %p865_p12 = scmp.ne.s32.totalorder %s861_s19, 0 }
  0x47   : > { %430 = dma.hbm_to_vmem [thread:$0]  (!%p864_p11), %s751_s27, 128, %s753_s23, %s764_s29, %s638_s25, %s639_s26, %s640_s21  }
  0x48   : > { %158 = sbr.rel (%p865_p12) target bundleno = 493 (0x1ed), region = 28  ;;  %s160_s30 = sand.u32 (!%p865_p12), 1, %s618_s10  }
  0x49   : > { %s396_s3 = sshll.u32 (!%p865_p12), %s160_s30, 3  ;;  %s161_s4 = scalar_lea.sflag (!%p865_p12), [#allocation4], %s160_s30 }
  0x4a   : > { %s164_s5 = scalar_lea.vmem (!%p865_p12), [#allocation3], %s396_s3  ;;  %p866_p0 = scmp.ne.s32.totalorder (!%p865_p12), %s860_s18, 0 }
  0x4f   : > { %601 = dma.done.wait (%p866_p0), %s161_s4, 128  }
  0x50   : > { %603 = vsyncadd (%p866_p0), %s161_s4, 4294967168  ;;  %p867_p5 = scmp.ne.s32.totalorder %s859_s17, 0 }
  0x52   : > { %605 = dma.done.wait (%p867_p5), [#allocation7], 64  }
  0x53   : > { %607 = vsyncadd (%p867_p5), [#allocation7], 4294967232  ;;  %p398_p11 = scmp.ne.s32.totalorder %s626_s12, 0 }
  0x54   : > { %v641_v0 = vmov (!%p398_p11), 0.0  }
  0x55   : > { %188 = sbr.rel (%p398_p11) target bundleno = 92 (0x5c), region = 40  ;;  %189 = vst [vmem:[#allocation2] sm:$0xf] (!%p398_p11), %v641_v0  ;;  %190 = vst [vmem:[#allocation2 + $0x4] sm:$0xf] (!%p398_p11), %v641_v0 }
  0x5c PF: > { %v191_v1 = vld [vmem:[#allocation2] sm:$0xf]  ;;  %v193_v2 = vld [vmem:[%s164_s5] sm:$0xf]  ;;  %v192_v3 = vld [vmem:[#allocation2 + $0x4] sm:$0xf] }
  0x5d   : > { %v195_v4 = vadd.f32 %v193_v2, %v191_v1  ;;  %v194_v5 = vld [vmem:[%s164_s5 + $0x4] sm:$0xf]  ;;  %p399_p4 = scmp.ne.s32.totalorder %s626_s12, 1 }
  0x5e   : > { %v196_v6 = vadd.f32 %v194_v5, %v192_v3  ;;  %vm205_vm0 = vcmask (!%p399_p4), 1043456   ;;  %v214_v11 = vld [vmem:[#allocation6] sm:$0xf] (!%p399_p4)  ;;  %v642_v12 = vmov (!%p399_p4), 0.0   ;;  %vm643_vm1 = vmmov (!%p399_p4), 0  }
  0x5f   : > { %197 = vst [vmem:[#allocation2] sm:$0xf] %v195_v4  ;;  %202 = sbr.rel (%p399_p4) target bundleno = 468 (0x1d4), region = 44  ;;  %408 = vmatprep.subr.mxu0 (!%p399_p4), %v642_v12  ;;  %410 = vmatprep.mubr.msk.f32.mxu0 (!%p399_p4), %vm643_vm1, %v642_v12  ;;  %v217_v13 = vlaneseq (!%p399_p4)  ;;  %vm227_vm2 = vcmask (!%p399_p4), 1041409   ;;  %vm229_vm3 = vcmask (!%p399_p4), 31744   ;;  %vm305_vm4 = vcmask (!%p399_p4), 25600  }
  0x60   : > { %198 = vst [vmem:[#allocation2 + $0x4] sm:$0xf] %v196_v6  ;;  %409 = vmatpush3.msk.msra.mxu0 (!%p399_p4), %vm205_vm0, %v214_v11 }
  0x61   : > { %v218_v14 = vand.u32 (!%p399_p4), 127, %v217_v13  ;;  %v220_v15 = vshrl.u32 (!%p399_p4), %v217_v13, 7 }
  0x63   : > { %v221_v17 = vsub.s32 (!%p399_p4), %v218_v14, %v220_v15 }
  0x66   : > { %v203_v7 = vld [vmem:[#allocation2] sm:$0xf] }
  0x67   : > { %v204_v8 = vld [vmem:[#allocation2 + $0x4] sm:$0xf]  ;;  %v206_v9 = vsel %vm205_vm0, %v203_v7, 0.0 }
  0x68   : > { %207 = vadd.xlane.f32.xlu0 %v206_v9  ;;  %v209_v10 = vsel %vm205_vm0, %v204_v8, 0.0 }
  0x6c   : > { %210 = vadd.xlane.f32.xlu0 %v209_v10 }
  0xf5   : > { %v208_v16 = vpop.xlane.xlu0 %207 }
  0xf6   : > { %v212_v18 = vmul.f32 0.00390625, %v208_v16 }
  0xf8   : > { %v222_v21 = vrot.slane %v212_v18, %v221_v17 }
  0xf9   : > { %v211_v19 = vpop.xlane.xlu0 %210 }
  0xfa   : > { %v213_v20 = vmul.f32 0.00390625, %v211_v19 }
  0xfc   : > { %v226_v22 = vrot.slane %v213_v20, %v221_v17 }
  0xfe   : > { %v228_v23 = vsel %vm227_vm2, %v226_v22, %v222_v21 }
  0xff   : > { %411 = vmatmul.mubr.msk.f32.vlgmr.msra.gmra.mrb[0].mxu0 %vm229_vm3, %v228_v23 }
 0x1d2   : > { %v301_v24 = vpop.f32.mrb[0].mxu0 }
 0x1d3   : > { %306 = vst.msk [vmem:[#allocation8] sm:$0x3] %vm305_vm4, %v301_v24  ;;  %v412_v25 = vpop.f32.mrb[1].mxu0 }
 0x1d4 PF: > { %p807_p7 = scmp.eq.s32.totalorder %s389_s15, 1  ;;  %s644_s17 = smov [#allocation8]  }
 0x1d5   : > { %s316_s18 = sshll.u32 %s644_s17, 4  ;;  %s317_s18 = int_to_ptr.vmem [resolvable:$true] %s316_s18 }
 0x1d6   : > { %s550_s19 = scalar_lea.vmem %s317_s18, 32  ;;  %p557_p6 = scmp.lt.s32.totalorder %s317_s18, %s317_s18 }
 0x1d7   : > { %p551_p9 = scmp.ne.s32.totalorder %s317_s18, %s550_s19  ;;  %p558_p8 = scmp.lt.s32.totalorder %s550_s19, %s550_s19 }
 0x1d9   : > { %p552_p10 = pnand %p551_p9, %p807_p7  ;;  %p559_p13 = por %p558_p8, %p557_p6 }
 0x1db   : > { %p553_p3 = pneg %p552_p10 }
 0x1dd   : > { %p560_p1 = pnand %p559_p13, %p553_p3 }
 0x1df   : > { %563 = shalt.err (!%p560_p1)
}
 0x1e0   : > { %s564_s15 = scalar_lea.hbm %s853_s2, 32 }
 0x1e1   : > { %p565_p2 = scmp.ne.s32.totalorder %s853_s2, %s564_s15  ;;  %p570_p5 = scmp.lt.u32.totalorder %s564_s15, %s853_s2 }
 0x1e3   : > { %p566_p12 = pnand %p565_p2, %p807_p7 }
 0x1e5   : > { %p567_p0 = pneg %p566_p12 }
 0x1e7   : > { %p572_p11 = pnand %p570_p5, %p567_p0 }
 0x1e9   : > { %575 = shalt.err (!%p572_p11)
}
 0x1ea   : > { %420 = dma.vmem_to_hbm [thread:$0]  (%p807_p7), %s317_s18, 32, %s853_s2, [#allocation5]  }
 0x1eb   : > { %609 = dma.done.wait (%p807_p7), [#allocation5], 32  }
 0x1ec   : > { %611 = vsyncadd (%p807_p7), [#allocation5], 4294967264 }
 0x1ed PF: > { %s17_s14 = sadd.s32 1, %s634_s14   ;;  %s869_s9 = smov %s618_s10 }
 0x1ee   : > { %p14_p4 = scmp.ge.s32.totalorder %s17_s14, 4   ;;  %s870_s10 = smov %s622_s11 }
 0x1ef   : > { %s871_s11 = smov %s760_s28  ;;  %s872_s12 = smov %s630_s13 }
 0x1f0   : > { %s873_s13 = smov %s875_s7  ;;  %16 = sbr.rel (!%p14_p4) target bundleno = 6 (0x6), region = 78 }
 0x1f7   :  { %329 = vsyncpa [#allocation4], 1 }
 0x1f8   :  { %331 = vsyncpa [#allocation4 + $0x1], 1 }
 0x1f9   :  { %332 = vsyncpa [#allocation7], 1 }
 0x1fa   :  { %333 = vsyncpa [#allocation5], 1 }
 0x1fb   :  { %335 = vsyncpa [#allocation5 + $0x1], 1 }

</bundles_post_ra>
